<compile_context>
chip_gen: v7x
topology: tpu7x:2x2x1
jax: 0.10.0
libtpu: 0.0.40
codegen_flags: <defaults>
</compile_context>

<pallas_src>
import functools

import jax
import jax.numpy as jnp
from jax.experimental import pallas as pl
from jax.experimental.pallas import tpu as pltpu


# --------------------------------------------------------------------------- #
# K1: pass-1 forward — logits accumulated over D tiles; epilogue emits CE loss,
#     raw (pre-softmax + bias) logits, dlogits and db.
# --------------------------------------------------------------------------- #
def _pass1_forward_kernel(x_ref, wt_ref, b_ref, onehot_ref,
                          loss_ref, logits_ref, dl_ref, db_ref):
    i = pl.program_id(0)

    @pl.when(i == 0)
    def _():
        logits_ref[...] = jnp.zeros_like(logits_ref)

    # partial logits: x_tile [B, TD] contracted with wt_tile [C, TD] -> [B, C]
    logits_ref[...] += jax.lax.dot_general(
        x_ref[...], wt_ref[...],
        dimension_numbers=(((1,), (1,)), ((), ())),
        preferred_element_type=jnp.float32)

    @pl.when(i == pl.num_programs(0) - 1)
    def _():
        onehot = onehot_ref[...]
        bsz = onehot.shape[0]
        logits = logits_ref[...] + b_ref[...]
        logits_ref[...] = logits                   # keep raw logits for K2 (no 2nd fwd)
        m = jnp.max(logits, axis=-1, keepdims=True)
        z = logits - m
        e = jnp.exp(z)
        s = jnp.sum(e, axis=-1, keepdims=True)
        logp = z - jnp.log(s)
        loss_ref[0, 0] = -jnp.sum(onehot * logp) / bsz
        dl = (e / s - onehot) / bsz
        dl_ref[...] = dl
        db_ref[...] = jnp.sum(dl, axis=0, keepdims=True)


# --------------------------------------------------------------------------- #
# K2: pass-1 backward per D tile — residual rW (lane-dense), p2 accumulation for
#     the perturbed logits, deferred (VMEM) sum-of-squares accumulators.
#     Epilogue: objective, eps_n, scale/eps_n, dlogits at perturbed parameters.
# --------------------------------------------------------------------------- #
def _pass1_backward_kernel(scale, eps, fudge,
                           dl_ref, db_ref, gb_ref, logits_ref, onehot_ref,
                           x_ref, gwt_ref,
                           rw_ref, obj_ref, epsn_ref, c1_ref, dlv_ref,
                           p2_ref, sqr_ref, sqd_ref):
    i = pl.program_id(0)

    @pl.when(i == 0)
    def _():
        p2_ref[...] = jnp.zeros_like(p2_ref)
        sqr_ref[...] = jnp.zeros_like(sqr_ref)
        sqd_ref[...] = jnp.zeros_like(sqd_ref)

    dl = dl_ref[...]                               # [B, C]
    x_t = x_ref[...]                               # [B, TD]
    # dWt tile = dlogits^T @ x_tile (contract batch) -> [C, TD], lane-dense in D
    dwt = jax.lax.dot_general(
        dl, x_t, dimension_numbers=(((0,), (0,)), ((), ())),
        preferred_element_type=jnp.float32)
    rw = dwt - gwt_ref[...]                        # residual = gradient - gradient_data
    rw_ref[...] = rw

    # eps_n-independent part of the perturbed logits: p2 += x_tile @ rW_tile^T  [B, C]
    p2_ref[...] += jax.lax.dot_general(
        x_t, rw, dimension_numbers=(((1,), (1,)), ((), ())),
        preferred_element_type=jnp.float32)

    # deferred reductions: element-wise squares into VMEM, one XLU reduce at the end
    sqr_ref[...] += rw * rw
    sqd_ref[...] += dwt * dwt

    @pl.when(i == pl.num_programs(0) - 1)
    def _():
        onehot = onehot_ref[...]
        bsz = onehot.shape[0]
        db = db_ref[...]
        rb = db - gb_ref[...]
        obj_ref[0, 0] = 0.5 * scale * (jnp.sum(sqr_ref[...]) + jnp.sum(rb * rb))
        gnorm = jnp.sqrt(jnp.sum(sqd_ref[...]) + jnp.sum(db * db))
        eps_n = eps / jnp.maximum(gnorm, fudge)    # fudge guards degenerate 0-gradient
        epsn_ref[0, 0] = eps_n
        c1_ref[0, 0] = scale / eps_n               # scalar multiply later, no vector div
        # perturbed logits via linearity: logits + eps_n * (x @ rW^T + rb)
        logits_v = logits_ref[...] + eps_n * (p2_ref[...] + rb)
        m = jnp.max(logits_v, axis=-1, keepdims=True)
        e = jnp.exp(logits_v - m)
        p = e / jnp.sum(e, axis=-1, keepdims=True)
        dlv_ref[...] = (p - onehot) / bsz          # dlogits at perturbed parameters


# --------------------------------------------------------------------------- #
# K3: pass-2 backward fused with the candidate-grad update (per D tile, parallel).
#     dvx - dx = (dlv - dl) @ Wt + eps_n * (dlv @ rW)   [Wt_new = Wt + eps_n*rW]
#     grad_out = grad_in + (scale/eps_n) * (dvx - dx) + task_reg * dx
#     grad_in is aliased to grad_out (in-place "+=").
# --------------------------------------------------------------------------- #
def _grad_update_kernel(task_reg,
                        epsn_ref, c1_ref, dl_ref, dlv_ref,
                        wt_ref, rw_ref, gin_ref,
                        gout_ref):
    eps_n = epsn_ref[0, 0]
    c1 = c1_ref[0, 0]                              # scale / eps_n
    dl = dl_ref[...]
    dlv = dlv_ref[...]
    wt = wt_ref[...]
    fd = (jnp.dot(dlv - dl, wt, preferred_element_type=jnp.float32)
          + eps_n * jnp.dot(dlv, rw_ref[...], preferred_element_type=jnp.float32))
    out = gin_ref[...] + c1 * fd
    if task_reg != 0.0:                            # static (trace-time) branch
        out = out + task_reg * jnp.dot(dl, wt, preferred_element_type=jnp.float32)
    gout_ref[...] = out


# --------------------------------------------------------------------------- #
# Wrapper: functional equivalent of PearlmutterEuclidean.forward ('forward' impl).
# --------------------------------------------------------------------------- #
def _choose_tile(d):
    # d is a multiple of 128 (padded); take the largest tile that divides it.
    for td in (16384, 8192, 4096, 2048, 1024, 512, 256, 128):
        if d % td == 0:
            return td
    return d                                       # unreachable after 128-padding


def pearlmutter_euclidean_forward(params, gradient_data, candidate, labels,
                                  candidate_grad, *, scale=1.0, eps=1e-3,
                                  task_regularization=0.0, fudge_factor=1e-6):
    wt, b = params                                 # wt: [C, D] (transposed), b: [1, C]
    gwt, gb = gradient_data
    bsz = candidate.shape[0]
    num_classes, d = wt.shape

    x = candidate.reshape(bsz, d).astype(jnp.float32)
    grad_in = candidate_grad.reshape(bsz, d).astype(jnp.float32)
    wt = wt.astype(jnp.float32)
    gwt = gwt.astype(jnp.float32)
    b = b.astype(jnp.float32)
    gb = gb.astype(jnp.float32)
    onehot = jax.nn.one_hot(labels, num_classes, dtype=jnp.float32)

    # Pad D up to a lane multiple (zeros are exact no-ops for every quantity here).
    d_pad = ((d + 127) // 128) * 128
    if d_pad != d:
        pad = ((0, 0), (0, d_pad - d))
        x = jnp.pad(x, pad)
        grad_in = jnp.pad(grad_in, pad)
        wt = jnp.pad(wt, pad)
        gwt = jnp.pad(gwt, pad)

    td = _choose_tile(d_pad)
    nt = d_pad // td

    vmem = pl.BlockSpec(memory_space=pltpu.MemorySpace.VMEM)   # small, fully resident
    smem = pl.BlockSpec(memory_space=pltpu.MemorySpace.SMEM)   # scalars

    def _tiled(shape):
        # Deeper pipelining on the wide HBM streams (DMA-latency bound regime).
        if nt >= 3:
            return pl.BlockSpec(shape, lambda i: (0, i), pipeline_mode=pl.Buffered(3))
        return pl.BlockSpec(shape, lambda i: (0, i))

    x_tile = _tiled((bsz, td))                       # [B, TD] input tiles
    ct_tile = _tiled((num_classes, td))              # [C, TD] input tiles
    x_tile_o = pl.BlockSpec((bsz, td), lambda i: (0, i))          # output tiles
    ct_tile_o = pl.BlockSpec((num_classes, td), lambda i: (0, i))

    cp_arb = pltpu.CompilerParams(dimension_semantics=("arbitrary",),
                                  vmem_limit_bytes=32 * 1024 * 1024)
    cp_par = pltpu.CompilerParams(dimension_semantics=("parallel",),
                                  vmem_limit_bytes=32 * 1024 * 1024)

    # K1: pass-1 forward (loss, raw logits, dlogits, db)
    task_loss, logits, dlogits, db = pl.pallas_call(
        _pass1_forward_kernel,
        grid=(nt,),
        in_specs=[x_tile, ct_tile, vmem, vmem],
        out_specs=(smem, vmem, vmem, vmem),
        out_shape=(jax.ShapeDtypeStruct((1, 1), jnp.float32),
                   jax.ShapeDtypeStruct((bsz, num_classes), jnp.float32),
                   jax.ShapeDtypeStruct((bsz, num_classes), jnp.float32),
                   jax.ShapeDtypeStruct((1, num_classes), jnp.float32)),
        compiler_params=cp_arb,
    )(x, wt, b, onehot)

    # K2: pass-1 backward (rW tiles, p2 accumulation, objective/eps_n, dlogits_v)
    rw, obj, eps_n, c1, dlogits_v = pl.pallas_call(
        functools.partial(_pass1_backward_kernel, scale, eps, fudge_factor),
        grid=(nt,),
        in_specs=[vmem, vmem, vmem, vmem, vmem, x_tile, ct_tile],
        out_specs=(ct_tile_o, smem, smem, smem, vmem),
        out_shape=(jax.ShapeDtypeStruct((num_classes, d_pad), jnp.float32),
                   jax.ShapeDtypeStruct((1, 1), jnp.float32),
                   jax.ShapeDtypeStruct((1, 1), jnp.float32),
                   jax.ShapeDtypeStruct((1, 1), jnp.float32),
                   jax.ShapeDtypeStruct((bsz, num_classes), jnp.float32)),
        scratch_shapes=[pltpu.VMEM((bsz, num_classes), jnp.float32),      # p2
                        pltpu.VMEM((num_classes, td), jnp.float32),       # sum rw^2
                        pltpu.VMEM((num_classes, td), jnp.float32)],      # sum dwt^2
        compiler_params=cp_arb,
    )(dlogits, db, gb, logits, onehot, x, gwt)

    # K3: pass-2 backward + finite-difference grad update, aliased in-place ("+=")
    new_grad = pl.pallas_call(
        functools.partial(_grad_update_kernel, task_regularization),
        grid=(nt,),
        in_specs=[smem, smem, vmem, vmem, ct_tile, ct_tile, x_tile_o],
        out_specs=x_tile_o,
        out_shape=jax.ShapeDtypeStruct((bsz, d_pad), jnp.float32),
        input_output_aliases={6: 0},               # grad_in -> grad_out ("+=")
        compiler_params=cp_par,                    # per-tile independent (megacore OK)
    )(eps_n, c1, dlogits, dlogits_v, wt, rw, grad_in)

    # parameters are restored by construction (never mutated)
    grad = new_grad[:, :d].reshape(candidate.shape)
    return obj[0, 0], task_loss[0, 0], grad


# --------------------------------------------------------------------------- #
# Pure-JAX reference for verification.
# --------------------------------------------------------------------------- #
def _reference(wt, b, gwt, gb, candidate, labels, candidate_grad,
               scale, eps, fudge, task_reg):
    bsz = candidate.shape[0]
    x = candidate.reshape(bsz, -1).astype(jnp.float32)
    onehot = jax.nn.one_hot(labels, wt.shape[0], dtype=jnp.float32)

    def loss_fn(wt_, b_, x_):
        logits = x_ @ wt_.T + b_
        logp = jax.nn.log_softmax(logits, axis=-1)
        return -jnp.mean(jnp.sum(onehot * logp, axis=-1))

    task_loss = loss_fn(wt, b, x)
    dwt, db, dx = jax.grad(loss_fn, argnums=(0, 1, 2))(wt, b, x)
    rw, rb = dwt - gwt, db - gb
    obj = 0.5 * scale * (jnp.sum(rw ** 2) + jnp.sum(rb ** 2))
    gnorm = jnp.sqrt(jnp.sum(dwt ** 2) + jnp.sum(db ** 2))
    eps_n = eps / jnp.maximum(gnorm, fudge)
    dvx = jax.grad(loss_fn, argnums=2)(wt + eps_n * rw, b + eps_n * rb, x)
    grad = (candidate_grad.reshape(bsz, -1)
            + (dvx - dx) / eps_n * scale + task_reg * dx)
    return obj, task_loss, grad.reshape(candidate.shape)


if __name__ == "__main__":
    key = jax.random.PRNGKey(0)
    kx, kw, kl, kgx, kgl = jax.random.split(key, 5)

    B, C, H, W_sp = 2, 4, 16, 16
    NUM_CLASSES = 16
    D = C * H * W_sp                               # 1024 -> single 1024-wide tile

    candidate = jax.random.normal(kx, (B, C, H, W_sp), jnp.float32)
    labels = jax.random.randint(kl, (B,), 0, NUM_CLASSES)
    candidate_grad = jnp.zeros((B, C, H, W_sp), jnp.float32)

    # deterministic "model" parameters, stored transposed [C, D] (lane-dense in D)
    wt = jax.random.normal(kw, (NUM_CLASSES, D), jnp.float32) * 0.05
    b = jnp.zeros((1, NUM_CLASSES), jnp.float32)

    # synthetic gradient_data: gradients of the same model at different data
    true_x = jax.random.normal(kgx, (B, D), jnp.float32)
    true_labels = jax.random.randint(kgl, (B,), 0, NUM_CLASSES)
    true_onehot = jax.nn.one_hot(true_labels, NUM_CLASSES, dtype=jnp.float32)
    p_true = jax.nn.softmax(true_x @ wt.T + b, axis=-1)
    dl_true = (p_true - true_onehot) / B
    gwt = dl_true.T @ true_x                       # [NUM_CLASSES, D]
    gb = jnp.sum(dl_true, axis=0, keepdims=True)

    obj, task_loss, new_grad = pearlmutter_euclidean_forward(
        (wt, b), (gwt, gb), candidate, labels, candidate_grad,
        scale=1.0, eps=1e-3, task_regularization=0.0)
    jax.block_until_ready((obj, task_loss, new_grad))

    r_obj, r_loss, r_grad = _reference(wt, b, gwt, gb, candidate, labels,
                                       candidate_grad, 1.0, 1e-3, 1e-6, 0.0)
    assert jnp.allclose(obj, r_obj, rtol=1e-3, atol=1e-5), (obj, r_obj)
    assert jnp.allclose(task_loss, r_loss, rtol=1e-3, atol=1e-5), (task_loss, r_loss)
    # finite-difference term amplifies rounding noise by 1/eps_n -> loose tolerance
    max_abs = jnp.max(jnp.abs(new_grad - r_grad))
    assert max_abs <= 1e-2 + 1e-2 * jnp.max(jnp.abs(r_grad)), float(max_abs)

    print("KERNEL_OK")
</pallas_src>

<mosaic_0001>
module attributes {stable_mosaic.version = 11 : i64} {
  func.func @_pass1_forward_kernel(%arg0: i32, %arg1: memref<2x1024xf32, #tpu.memory_space<vmem>>, %arg2: memref<16x1024xf32, #tpu.memory_space<vmem>>, %arg3: memref<1x16xf32, #tpu.memory_space<vmem>>, %arg4: memref<2x16xf32, #tpu.memory_space<vmem>>, %arg5: memref<1x1xf32, #tpu.memory_space<smem>>, %arg6: memref<2x16xf32, #tpu.memory_space<vmem>>, %arg7: memref<2x16xf32, #tpu.memory_space<vmem>>, %arg8: memref<1x16xf32, #tpu.memory_space<vmem>>) attributes {dimension_semantics = [#tpu.dimension_semantics<arbitrary>], iteration_bounds = array<i64: 1>, scalar_prefetch = 0 : i64, scratch_operands = 0 : i64, tpu.core_type = #tpu.core_type<tc>, window_params = [{transform_indices = @transform_0, window_bounds = array<i64: 2, 1024>}, {transform_indices = @transform_1, window_bounds = array<i64: 16, 1024>}, {pipeline_mode = #tpu.pipeline_mode<synchronous>, transform_indices = @transform_2, window_bounds = array<i64: 1, 16>}, {pipeline_mode = #tpu.pipeline_mode<synchronous>, transform_indices = @transform_3, window_bounds = array<i64: 2, 16>}, {transform_indices = @transform_4, window_bounds = array<i64: 1, 1>}, {pipeline_mode = #tpu.pipeline_mode<synchronous>, transform_indices = @transform_5, window_bounds = array<i64: 2, 16>}, {pipeline_mode = #tpu.pipeline_mode<synchronous>, transform_indices = @transform_6, window_bounds = array<i64: 2, 16>}, {pipeline_mode = #tpu.pipeline_mode<synchronous>, transform_indices = @transform_7, window_bounds = array<i64: 1, 16>}]} {
    %c0_i32 = arith.constant 0 : i32
    %0 = arith.cmpi eq, %arg0, %c0_i32 : i32
    %1 = arith.extui %0 : i1 to i32
    %c0_i32_0 = arith.constant 0 : i32
    %2 = arith.cmpi ne, %1, %c0_i32_0 : i32
    scf.if %2 {
      %cst_10 = arith.constant 0.000000e+00 : f32
      %12 = vector.broadcast %cst_10 : f32 to vector<2x16xf32>
      %c0_11 = arith.constant 0 : index
      %c0_12 = arith.constant 0 : index
      %13 = vector.load %arg6[%c0_11, %c0_12] : memref<2x16xf32, #tpu.memory_space<vmem>>, vector<2x16xf32>
      tpu.vector_store %arg6[%c0_11, %c0_12], %12 {strides = array<i32>} : memref<2x16xf32, #tpu.memory_space<vmem>>, vector<2x16xf32>,
    } else {
    }
    %c0 = arith.constant 0 : index
    %c0_1 = arith.constant 0 : index
    %3 = vector.load %arg6[%c0, %c0_1] : memref<2x16xf32, #tpu.memory_space<vmem>>, vector<2x16xf32>
    %c0_2 = arith.constant 0 : index
    %c0_3 = arith.constant 0 : index
    %4 = vector.load %arg1[%c0_2, %c0_3] : memref<2x1024xf32, #tpu.memory_space<vmem>>, vector<2x1024xf32>
    %c0_4 = arith.constant 0 : index
    %c0_5 = arith.constant 0 : index
    %5 = vector.load %arg2[%c0_4, %c0_5] : memref<16x1024xf32, #tpu.memory_space<vmem>>, vector<16x1024xf32>
    %cst = arith.constant dense<0.000000e+00> : vector<2x16xf32>
    %6 = tpu.matmul %4, %5, %cst {dimension_numbers = #tpu.dot_dimension_numbers<[1], [1], [0], [0], [0, 0, 1, 0], [], []>} : vector<2x1024xf32>, vector<16x1024xf32>, vector<2x16xf32> -> vector<2x16xf32>
    %7 = arith.addf %3, %6 : vector<2x16xf32>
    %c0_6 = arith.constant 0 : index
    %c0_7 = arith.constant 0 : index
    %8 = vector.load %arg6[%c0_6, %c0_7] : memref<2x16xf32, #tpu.memory_space<vmem>>, vector<2x16xf32>
    tpu.vector_store %arg6[%c0_6, %c0_7], %7 {strides = array<i32>} : memref<2x16xf32, #tpu.memory_space<vmem>>, vector<2x16xf32>,
    %c0_i32_8 = arith.constant 0 : i32
    %9 = arith.cmpi eq, %arg0, %c0_i32_8 : i32
    %10 = arith.extui %9 : i1 to i32
    %c0_i32_9 = arith.constant 0 : i32
    %11 = arith.cmpi ne, %10, %c0_i32_9 : i32
    scf.if %11 {
      %c0_10 = arith.constant 0 : index
      %c0_11 = arith.constant 0 : index
      %12 = vector.load %arg4[%c0_10, %c0_11] : memref<2x16xf32, #tpu.memory_space<vmem>>, vector<2x16xf32>
      %c0_12 = arith.constant 0 : index
      %c0_13 = arith.constant 0 : index
      %13 = vector.load %arg6[%c0_12, %c0_13] : memref<2x16xf32, #tpu.memory_space<vmem>>, vector<2x16xf32>
      %c0_14 = arith.constant 0 : index
      %c0_15 = arith.constant 0 : index
      %14 = vector.load %arg3[%c0_14, %c0_15] : memref<1x16xf32, #tpu.memory_space<vmem>>, vector<1x16xf32>
      %15 = vector.broadcast %14 : vector<1x16xf32> to vector<2x16xf32>
      %16 = arith.addf %13, %15 : vector<2x16xf32>
      %c0_16 = arith.constant 0 : index
      %c0_17 = arith.constant 0 : index
      %17 = vector.load %arg6[%c0_16, %c0_17] : memref<2x16xf32, #tpu.memory_space<vmem>>, vector<2x16xf32>
      tpu.vector_store %arg6[%c0_16, %c0_17], %16 {strides = array<i32>} : memref<2x16xf32, #tpu.memory_space<vmem>>, vector<2x16xf32>,
      %cst_18 = arith.constant dense<0xFF800000> : vector<2xf32>
      %18 = vector.multi_reduction <maximumf>, %16, %cst_18 [1] : vector<2x16xf32> to vector<2xf32>
      %19 = vector.shape_cast %18 : vector<2xf32> to vector<2x1xf32>
      %20 = vector.broadcast %19 : vector<2x1xf32> to vector<2x16xf32>
      %21 = arith.subf %16, %20 : vector<2x16xf32>
      %22 = math.exp %21 : vector<2x16xf32>
      %cst_19 = arith.constant dense<0.000000e+00> : vector<2xf32>
      %23 = vector.multi_reduction <add>, %22, %cst_19 [1] : vector<2x16xf32> to vector<2xf32>
      %24 = vector.shape_cast %23 : vector<2xf32> to vector<2x1xf32>
      %25 = math.log %24 : vector<2x1xf32>
      %26 = vector.broadcast %25 : vector<2x1xf32> to vector<2x16xf32>
      %27 = arith.subf %21, %26 : vector<2x16xf32>
      %28 = arith.mulf %12, %27 : vector<2x16xf32>
      %29 = vector.shape_cast %28 : vector<2x16xf32> to vector<1x2x16xf32>
      %cst_20 = arith.constant dense<0.000000e+00> : vector<1xf32>
      %30 = vector.multi_reduction <add>, %29, %cst_20 [1, 2] : vector<1x2x16xf32> to vector<1xf32>
      %31 = vector.shape_cast %30 : vector<1xf32> to vector<1x1x1xf32>
      %32 = vector.extract %31[0, 0, 0] : f32 from vector<1x1x1xf32>
      %cst_21 = arith.constant 0.000000e+00 : f32
      %33 = arith.subf %cst_21, %32 : f32
      %cst_22 = arith.constant 2.000000e+00 : f32
      %34 = arith.divf %33, %cst_22 : f32
      %c0_23 = arith.constant 0 : index
      %c0_24 = arith.constant 0 : index
      %35 = memref.load %arg5[%c0_23, %c0_24] : memref<1x1xf32, #tpu.memory_space<smem>>
      memref.store %34, %arg5[%c0_23, %c0_24] : memref<1x1xf32, #tpu.memory_space<smem>>
      %36 = vector.broadcast %24 : vector<2x1xf32> to vector<2x16xf32>
      %37 = arith.divf %22, %36 : vector<2x16xf32>
      %38 = arith.subf %37, %12 : vector<2x16xf32>
      %cst_25 = arith.constant 2.000000e+00 : f32
      %39 = vector.broadcast %cst_25 : f32 to vector<2x16xf32>
      %40 = arith.divf %38, %39 : vector<2x16xf32>
      %c0_26 = arith.constant 0 : index
      %c0_27 = arith.constant 0 : index
      %41 = vector.load %arg7[%c0_26, %c0_27] : memref<2x16xf32, #tpu.memory_space<vmem>>, vector<2x16xf32>
      tpu.vector_store %arg7[%c0_26, %c0_27], %40 {strides = array<i32>} : memref<2x16xf32, #tpu.memory_space<vmem>>, vector<2x16xf32>,
      %cst_28 = arith.constant dense<0.000000e+00> : vector<16xf32>
      %42 = vector.multi_reduction <add>, %40, %cst_28 [0] : vector<2x16xf32> to vector<16xf32>
      %43 = vector.shape_cast %42 : vector<16xf32> to vector<1x16xf32>
      %c0_29 = arith.constant 0 : index
      %c0_30 = arith.constant 0 : index
      %44 = vector.load %arg8[%c0_29, %c0_30] : memref<1x16xf32, #tpu.memory_space<vmem>>, vector<1x16xf32>
      tpu.vector_store %arg8[%c0_29, %c0_30], %43 {strides = array<i32>} : memref<1x16xf32, #tpu.memory_space<vmem>>, vector<1x16xf32>,
    } else {
    }
    return
  }
  func.func @transform_0(%arg0: i32) -> (i32, i32) {
    %c0_i32 = arith.constant 0 : i32
    %c0_i32_0 = arith.constant 0 : i32
    return %c0_i32, %arg0 : i32, i32
  }
  func.func @transform_1(%arg0: i32) -> (i32, i32) {
    %c0_i32 = arith.constant 0 : i32
    %c0_i32_0 = arith.constant 0 : i32
    return %c0_i32, %arg0 : i32, i32
  }
  func.func @transform_2(%arg0: i32) -> (i32, i32) {
    %c0_i32 = arith.constant 0 : i32
    %c0_i32_0 = arith.constant 0 : i32
    %c0_i32_1 = arith.constant 0 : i32
    return %c0_i32, %c0_i32_0 : i32, i32
  }
  func.func @transform_3(%arg0: i32) -> (i32, i32) {
    %c0_i32 = arith.constant 0 : i32
    %c0_i32_0 = arith.constant 0 : i32
    %c0_i32_1 = arith.constant 0 : i32
    return %c0_i32, %c0_i32_0 : i32, i32
  }
  func.func @transform_4(%arg0: i32) -> (i32, i32) {
    %c0_i32 = arith.constant 0 : i32
    %c0_i32_0 = arith.constant 0 : i32
    %c0_i32_1 = arith.constant 0 : i32
    return %c0_i32, %c0_i32_0 : i32, i32
  }
  func.func @transform_5(%arg0: i32) -> (i32, i32) {
    %c0_i32 = arith.constant 0 : i32
    %c0_i32_0 = arith.constant 0 : i32
    %c0_i32_1 = arith.constant 0 : i32
    return %c0_i32, %c0_i32_0 : i32, i32
  }
  func.func @transform_6(%arg0: i32) -> (i32, i32) {
    %c0_i32 = arith.constant 0 : i32
    %c0_i32_0 = arith.constant 0 : i32
    %c0_i32_1 = arith.constant 0 : i32
    return %c0_i32, %c0_i32_0 : i32, i32
  }
  func.func @transform_7(%arg0: i32) -> (i32, i32) {
    %c0_i32 = arith.constant 0 : i32
    %c0_i32_0 = arith.constant 0 : i32
    %c0_i32_1 = arith.constant 0 : i32
    return %c0_i32, %c0_i32_0 : i32, i32
  }
}

</mosaic_0001>

<bundles_post_ra>
// kernel: tpu_custom_call.1
= control target key start
LH: loop header
LB: loop body
LE: loop exit
PB: predicated region body
PF: predicated region fallthrough
CT: control target
= control target key end

     0   :  { %13 = vsyncpa [#allocation3], 0  ;;  %s826_s0 = inlined_call_operand.hbm [shape: f32[2,1024], index: 0, kind: input, shape index: {}]   ;;  %s827_s1 = inlined_call_operand.hbm [shape: f32[16,1024], index: 1, kind: input, shape index: {}]   ;;  %s828_s2 = inlined_call_operand.vmem [shape: f32[1,16], index: 2, kind: input, shape index: {}]   ;;  %s829_s3 = inlined_call_operand.vmem [shape: f32[2,16], index: 3, kind: input, shape index: {}]   ;;  %s830_s4 = inlined_call_operand.hbm [shape: f32[1,1], index: 4, kind: output, shape index: {0}]   ;;  %s831_s5 = inlined_call_operand.hbm [shape: f32[2,16], index: 5, kind: output, shape index: {1}]   ;;  %s832_s6 = inlined_call_operand.hbm [shape: f32[2,16], index: 6, kind: output, shape index: {2}]   ;;  %s833_s7 = inlined_call_operand.hbm [shape: f32[1,16], index: 7, kind: output, shape index: {3}]  }
   0x1   :  { %14 = vsyncpa [#allocation7], 0 }
   0x2   :  { %15 = vsyncpa [#allocation5], 0 }
   0x3   :  { %16 = vsyncpa [#allocation4], 0 }
   0x4   :  { %17 = vsyncpa [#allocation11], 0  ;;  %s683_s24 = smov [#allocation2]   ;;  %s684_s26 = smov [#allocation6]  }
   0x5   :  { %s24_s25 = sshll.u32 %s683_s24, 4  ;;  %s33_s27 = sshll.u32 %s684_s26, 4  ;;  %s25_s25 = int_to_ptr.vmem [resolvable:$true] %s24_s25  ;;  %s733_s27 = int_to_ptr.vmem [resolvable:$true] %s33_s27 }
   0x6   :  { %s553_s30 = scalar_lea.hbm %s826_s0, 256 }
   0x7   :  { %p554_p0 = scmp.ne.s32.totalorder %s826_s0, %s553_s30  ;;  %p557_p1 = scmp.lt.u32.totalorder %s553_s30, %s826_s0 }
   0x9   :  { %p559_p2 = pnand %p557_p1, %p554_p0 }
   0xb   :  { %562 = shalt.err (!%p559_p2)
}
   0xc   :  { %s563_s12 = scalar_lea.vmem %s25_s25, 256  ;;  %p568_p4 = scmp.lt.s32.totalorder %s25_s25, %s25_s25 }
   0xd   :  { %p564_p3 = scmp.ne.s32.totalorder %s25_s25, %s563_s12  ;;  %p569_p5 = scmp.lt.s32.totalorder %s563_s12, %s563_s12 }
   0xf   :  { %p570_p6 = por %p569_p5, %p568_p4 }
  0x11   :  { %p571_p7 = pnand %p570_p6, %p564_p3 }
  0x13   :  { %574 = shalt.err (!%p571_p7)
}
  0x14   :  { %27 = dma.hbm_to_vmem [thread:$0]  %s826_s0, 256, %s25_s25, [#allocation3]  }
  0x15   :  { %s575_s17 = scalar_lea.hbm %s827_s1, 2048 }
  0x16   :  { %p576_p8 = scmp.ne.s32.totalorder %s827_s1, %s575_s17  ;;  %p579_p9 = scmp.lt.u32.totalorder %s575_s17, %s827_s1 }
  0x18   :  { %p581_p10 = pnand %p579_p9, %p576_p8 }
  0x1a   :  { %584 = shalt.err (!%p581_p10)
}
  0x1b   :  { %s585_s22 = scalar_lea.vmem %s733_s27, 2048  ;;  %p590_p12 = scmp.lt.s32.totalorder %s733_s27, %s733_s27 }
  0x1c   :  { %p586_p11 = scmp.ne.s32.totalorder %s733_s27, %s585_s22  ;;  %p591_p13 = scmp.lt.s32.totalorder %s585_s22, %s585_s22 }
  0x1e   :  { %p592_p0 = por %p591_p13, %p590_p12 }
  0x20   :  { %p593_p1 = pnand %p592_p0, %p586_p11 }
  0x22   :  { %596 = shalt.err (!%p593_p1)
}
  0x23   :  { %s685_s0 = smov 1024   ;;  %s686_s23 = smov 64  }
  0x24   :  { %39 = dma.hbm_to_vmem [thread:$0]  %s827_s1, 2048, %s733_s27, [#allocation7], %s685_s0, %s685_s0, %s686_s23  }
  0x25   :  { %673 = dma.done.wait [#allocation3], 256  }
  0x26   :  { %674 = vsyncadd [#allocation3], 4294967040 }
  0x27   :  { %675 = dma.done.wait [#allocation7], 2048  }
  0x28   :  { %676 = vsyncadd [#allocation7], 4294965248  ;;  %v81_v0 = vlaneseq  ;;  %v687_v1 = vmov 1983009808   ;;  %v60_v6 = vld [vmem:[#allocation6 + $0x8] sm:$0xff]  ;;  %v59_v8 = vld [vmem:[#allocation6] sm:$0xff] }
  0x29   :  { %v79_v2 = vunpack.c.l.s4 %v687_v1  ;;  %v68_v7 = vld [vmem:[#allocation6 + $0x48] sm:$0xff]  ;;  %v67_v10 = vld [vmem:[#allocation6 + $0x40] sm:$0xff]  ;;  %v62_v11 = vld [vmem:[#allocation6 + $0x18] sm:$0xff]  ;;  %vm54_vm0 = vcmask 123904   ;;  %v688_v42 = vmov 0.0   ;;  %vm458_vm1 = vcmask 122880  }
  0x2a   :  { %v82_v3 = vshrl.u32 %v81_v0, 7  ;;  %v517_v9 = vpack.c.bf16 %v68_v7, %v60_v6  ;;  %v70_v12 = vld [vmem:[#allocation6 + $0x58] sm:$0xff]  ;;  %v519_v13 = vpack.c.bf16 %v67_v10, %v59_v8  ;;  %v61_v15 = vld [vmem:[#allocation6 + $0x10] sm:$0xff]  ;;  %v64_v21 = vld [vmem:[#allocation6 + $0x28] sm:$0xff]  ;;  %55 = vst.msk [vmem:[#allocation9] sm:$0x3] %vm54_vm0, %v688_v42 }
  0x2b   :  { %v80_v4 = vunpack.c.0.s8 %v79_v2  ;;  %v521_v14 = vpack.c.bf16 %v70_v12, %v62_v11  ;;  %v69_v16 = vld [vmem:[#allocation6 + $0x50] sm:$0xff]  ;;  %v72_v22 = vld [vmem:[#allocation6 + $0x68] sm:$0xff]  ;;  %v66_v24 = vld [vmem:[#allocation6 + $0x38] sm:$0xff] }
  0x2c   :  { %v57_v17 = vld [vmem:[#allocation2] sm:$0xff]  ;;  %518 = vmatprep.subr.bf16.mxu0 %v517_v9  ;;  %v523_v18 = vpack.c.bf16 %v69_v16, %v61_v15  ;;  %v525_v23 = vpack.c.bf16 %v72_v22, %v64_v21  ;;  %v74_v25 = vld [vmem:[#allocation6 + $0x78] sm:$0xff]  ;;  %v63_v28 = vld [vmem:[#allocation6 + $0x20] sm:$0xff] }
  0x2d   :  { %v83_v5 = vsub.s32 %v80_v4, %v82_v3  ;;  %v77_v20 = vcombine.high %v57_v17, %v57_v17  ;;  %520 = vmatpush1.bf16.xpose.msra.mxu0 %v519_v13  ;;  %522 = vmatprep.subr.bf16.mxu1 %v521_v14  ;;  %v71_v29 = vld [vmem:[#allocation6 + $0x60] sm:$0xff]  ;;  %v529_v30 = vpack.c.bf16 %v74_v25, %v66_v24  ;;  %v58_v31 = vld [vmem:[#allocation2 + $0x8] sm:$0xff]  ;;  %v65_v32 = vld [vmem:[#allocation6 + $0x30] sm:$0xff] }
  0x2e   :  { %524 = vmatpush1.bf16.xpose.msra.mxu1 %v523_v18  ;;  %526 = vmatprep.subr.bf16.mxu0 %v525_v23  ;;  %v73_v33 = vld [vmem:[#allocation6 + $0x70] sm:$0xff]  ;;  %v94_v35 = vcombine.high %v58_v31, %v58_v31  ;;  %v527_v37 = vpack.c.bf16 %v71_v29, %v63_v28 }
  0x2f   :  { %v84_v19 = vrot.slane %v57_v17, %v83_v5  ;;  %v91_v27 = vrot.slane %v77_v20, %v83_v5  ;;  %v101_v34 = vrot.slane %v58_v31, %v83_v5  ;;  %530 = vmatprep.subr.bf16.mxu1 %v529_v30  ;;  %v531_v39 = vpack.c.bf16 %v73_v33, %v65_v32  ;;  %v516_v56 = vld [vmem:[%s828_s2] ss:$0 sm:$0xff] }
  0x30   :  { %v108_v38 = vrot.slane %v94_v35, %v83_v5  ;;  %v405_v5 = vld [vmem:[%s829_s3] sm:$0x3]  ;;  %s689_s3 = smov [#allocation10]  }
  0x31   :  { %v92_v26 = vcombine.high %v84_v19, %v84_v19  ;;  %v93_v36 = vcombine.high %v91_v27, %v91_v27  ;;  %v109_v40 = vcombine.high %v101_v34, %v101_v34  ;;  %v56_v52 = vld [vmem:[#allocation9] sm:$0x3]  ;;  %s484_s28 = sshll.u32 %s689_s3, 4  ;;  %s485_s28 = int_to_ptr.vmem [resolvable:$true] %s484_s28 }
  0x32   :  { %v110_v41 = vcombine.high %v108_v38, %v108_v38  ;;  %s597_s29 = scalar_lea.vmem %s485_s28, 32  ;;  %p602_p3 = scmp.lt.s32.totalorder %s485_s28, %s485_s28 }
  0x33   :  { %183 = vmatprep.mubr.f32.mxu0 %v92_v26  ;;  %253 = vmatprep.mubr.f32.mxu1 %v93_v36  ;;  %p598_p2 = scmp.ne.s32.totalorder %s485_s28, %s597_s29  ;;  %p603_p4 = scmp.lt.s32.totalorder %s597_s29, %s597_s29 }
  0x34   :  { %184 = vmatmul.mubr.f32.vlgmr.msra.gmra.mrb[0].mxu0 %v84_v19 }
  0x35   :  { %254 = vmatmul.mubr.f32.vlgmr.msra.gmra.mrb[0].mxu1 %v91_v27  ;;  %528 = vmatpush1.bf16.xpose.msra.mxu0 %v527_v37  ;;  %p604_p5 = por %p603_p4, %p602_p3 }
  0x36   :  { %532 = vmatpush1.bf16.xpose.msra.mxu1 %v531_v39  ;;  %323 = vmatprep.mubr.f32.mxu0 %v109_v40 }
  0x37   :  { %393 = vmatprep.mubr.f32.mxu1 %v110_v41  ;;  %p605_p6 = pnand %p604_p5, %p598_p2 }
  0x3c   :  { %324 = vmatmul.mubr.f32.vlgmr.msra.gmra.mrb[2].mxu0 %v101_v34 }
  0x3d   :  { %394 = vmatmul.mubr.f32.vlgmr.msra.gmra.mrb[2].mxu1 %v108_v38 }
 0x107   :  { %v185_v43 = vpop.f32.mrb[0].mxu0 }
 0x108   :  { %v187_v44 = vpop.f32.mrb[1].mxu0  ;;  %v255_v45 = vpop.f32.mrb[0].mxu1 }
 0x109   :  { %v256_v46 = vadd.f32 %v255_v45, %v185_v43  ;;  %v257_v47 = vpop.f32.mrb[1].mxu1 }
 0x10f   :  { %v325_v48 = vpop.f32.mrb[2].mxu0 }
 0x110   :  { %v326_v49 = vadd.f32 %v325_v48, %v256_v46  ;;  %v327_v50 = vpop.f32.mrb[3].mxu0  ;;  %v395_v51 = vpop.f32.mrb[2].mxu1 }
 0x111   :  { %v397_v53 = vpop.f32.mrb[3].mxu1 }
 0x112   :  { %v396_v54 = vadd.f32 %v395_v51, %v326_v49 }
 0x114   :  { %v399_v55 = vadd.f32 %v396_v54, %v56_v52 }
 0x116   :  { %401 = vst.msk [vmem:[#allocation9] sm:$0x3] %vm54_vm0, %v399_v55 }
 0x11d   :  { %v406_v57 = vld [vmem:[#allocation9] sm:$0x3] }
 0x11e   :  { %v414_v58 = vadd.f32 %v516_v56, %v406_v57 }
 0x120   :  { %v416_v59 = vsel %vm54_vm0, %v414_v58, -inf  ;;  %415 = vst.msk [vmem:[#allocation9] sm:$0x3] %vm54_vm0, %v414_v58 }
 0x121   :  { %417 = vmax.xlane.f32.xlu0 %v416_v59 }
 0x1ae   :  { %v418_v60 = vpop.xlane.xlu0 %417 }
 0x1af   :  { %v419_v61 = vsub.f32 %v414_v58, %v418_v60 }
 0x1b1   :  { %v420_v62 = vmul.f32 1.442695, %v419_v61 }
 0x1b3   :  { %547 = vpow2.f32 %v420_v62 }
 0x1bd   :  { %v548_v63 = vpop.eup %547 }
 0x1be   :  { %v422_v0 = vsel %vm54_vm0, %v548_v63, 0.0 }
 0x1bf   :  { %423 = vadd.xlane.f32.xlu0 %v422_v0 }
 0x24c   :  { %v424_v1 = vpop.xlane.xlu0 %423 }
 0x24d   :  { %549 = vlog2.f32 %v424_v1 }
 0x24e   :  { %551 = vrcp.f32 %v424_v1 }
 0x257   :  { %v550_v2 = vpop.eup %549 }
 0x258   :  { %v552_v3 = vpop.eup %551  ;;  %v426_v4 = vmul.f32 0.6931472, %v550_v2 }
 0x259   :  { %v446_v6 = vmul.f32 %v552_v3, %v548_v63 }
 0x25a   :  { %v427_v7 = vsub.f32 %v419_v61, %v426_v4 }
 0x25b   :  { %v447_v8 = vsub.f32 %v446_v6, %v405_v5 }
 0x25c   :  { %v428_v9 = vmul.f32 %v427_v7, %v405_v5 }
 0x25d   :  { %v449_v10 = vmul.f32 0.5, %v447_v8 }
 0x25e   :  { %v429_v11 = vsel %vm54_vm0, %v428_v9, 0.0 }
 0x25f   :  { %v451_v12 = vsel %vm54_vm0, %v449_v10, 0.0  ;;  %430 = vadd.xlane.f32.xlu1 %v429_v11  ;;  %450 = vst.msk [vmem:[#allocation10] sm:$0x3] %vm54_vm0, %v449_v10 }
 0x260   :  { %v452_v13 = vrot.slane %v451_v12, 4 }
 0x262   :  { %v453_v14 = vadd.f32 %v452_v13, %v451_v12 }
 0x264   :  { %v454_v15 = vrot.slane %v453_v14, 2 }
 0x266   :  { %v455_v16 = vadd.f32 %v454_v15, %v453_v14 }
 0x268   :  { %v456_v17 = vrot.slane %v455_v16, 1 }
 0x26a   :  { %v457_v18 = vadd.f32 %v456_v17, %v455_v16 }
 0x26c   :  { %459 = vst.msk [vmem:[#allocation12] sm:$0x1] %vm458_vm1, %v457_v18 }
 0x26d   :  { %608 = shalt.err (!%p605_p6)
}
 0x26e   :  { %s609_s9 = scalar_lea.hbm %s832_s6, 32 }
 0x26f   :  { %p610_p7 = scmp.ne.s32.totalorder %s832_s6, %s609_s9  ;;  %p613_p8 = scmp.lt.u32.totalorder %s609_s9, %s832_s6 }
 0x271   :  { %p615_p9 = pnand %p613_p8, %p610_p7 }
 0x273   :  { %618 = shalt.err (!%p615_p9)
}
 0x274   :  { %487 = dma.vmem_to_hbm [thread:$0]  %s485_s28, 32, %s832_s6, [#allocation11]  }
 0x275   :  { %s690_s16 = smov [#allocation9]   ;;  %s691_s18 = smov [#allocation12]  }
 0x276   :  { %s474_s17 = sshll.u32 %s690_s16, 4  ;;  %s494_s19 = sshll.u32 %s691_s18, 4  ;;  %s475_s17 = int_to_ptr.vmem [resolvable:$true] %s474_s17  ;;  %s495_s19 = int_to_ptr.vmem [resolvable:$true] %s494_s19 }
 0x277   :  { %s619_s20 = scalar_lea.vmem %s475_s17, 32  ;;  %p624_p11 = scmp.lt.s32.totalorder %s475_s17, %s475_s17 }
 0x278   :  { %p620_p10 = scmp.ne.s32.totalorder %s475_s17, %s619_s20  ;;  %p625_p12 = scmp.lt.s32.totalorder %s619_s20, %s619_s20 }
 0x27a   :  { %p626_p13 = por %p625_p12, %p624_p11 }
 0x27c   :  { %p627_p0 = pnand %p626_p13, %p620_p10 }
 0x27e   :  { %630 = shalt.err (!%p627_p0)
}
 0x27f   :  { %s631_s0 = scalar_lea.hbm %s831_s5, 32 }
 0x280   :  { %p632_p1 = scmp.ne.s32.totalorder %s831_s5, %s631_s0  ;;  %p635_p2 = scmp.lt.u32.totalorder %s631_s0, %s831_s5 }
 0x282   :  { %p637_p3 = pnand %p635_p2, %p632_p1 }
 0x284   :  { %640 = shalt.err (!%p637_p3)
}
 0x285   :  { %477 = dma.vmem_to_hbm [thread:$0]  %s475_s17, 32, %s831_s5, [#allocation4]  }
 0x286   :  { %s641_s2 = scalar_lea.vmem %s495_s19, 16  ;;  %s645_s27 = scalar_lea.vmem %s495_s19, 32 }
 0x287   :  { %p642_p4 = scmp.ne.s32.totalorder %s495_s19, %s641_s2  ;;  %p646_p5 = scmp.lt.s32.totalorder %s495_s19, %s495_s19 }
 0x288   :  { %p647_p6 = scmp.lt.s32.totalorder %s645_s27, %s641_s2 }
 0x28a   :  { %p648_p7 = por %p647_p6, %p646_p5 }
 0x28c   :  { %p649_p8 = pnand %p648_p7, %p642_p4 }
 0x28e   :  { %652 = shalt.err (!%p649_p8)
}
 0x28f   :  { %s653_s29 = scalar_lea.hbm %s833_s7, 16 }
 0x290   :  { %p654_p9 = scmp.ne.s32.totalorder %s833_s7, %s653_s29  ;;  %p657_p10 = scmp.lt.u32.totalorder %s653_s29, %s833_s7 }
 0x292   :  { %p659_p11 = pnand %p657_p10, %p654_p9 }
 0x294   :  { %662 = shalt.err (!%p659_p11)
}
 0x295   :  { %497 = dma.vmem_to_hbm [thread:$0]  %s495_s19, 16, %s833_s7, [#allocation11]  }
 0x296   :  { %s663_s17 = scalar_lea.hbm %s830_s4, 16 }
 0x297   :  { %p664_p12 = scmp.ne.s32.totalorder %s830_s4, %s663_s17  ;;  %p667_p13 = scmp.lt.u32.totalorder %s663_s17, %s830_s4 }
 0x299   :  { %p669_p0 = pnand %p667_p13, %p664_p12 }
 0x2ec   :  { %v431_v19 = vpop.xlane.xlu1 %430 }
 0x2ed   :  { %v432_v20 = vrot.slane %v431_v19, 4 }
 0x2ef   :  { %v433_v21 = vadd.f32 %v432_v20, %v431_v19 }
 0x2f1   :  { %v434_v22 = vrot.slane %v433_v21, 2 }
 0x2f3   :  { %v435_v23 = vadd.f32 %v434_v22, %v433_v21 }
 0x2f5   :  { %v436_v24 = vrot.slane %v435_v23, 1 }
 0x2f7   :  { %v437_v25 = vadd.f32 %v436_v24, %v435_v23 }
 0x2f9   :  { %533 = vpush %v437_v25 }
 0x32a   :  { %s534_s12 = spop %533 }
 0x32b   :  { %s439_s13 = ssub.f32 0.0, %s534_s12 }
 0x32d   :  { %s442_s14 = smul.f32 0.5, %s439_s13 }
 0x32f   :  { %444 = sst [smem:[#allocation8]] %s442_s14 }
 0x330   :  { %672 = shalt.err (!%p669_p0)
}
 0x331   :  { %s692_s21 = smov [#allocation8]  }
 0x332   :  { %467 = dma.smem_to_hbm %s692_s21, 16, %s830_s4, [#allocation5]  }
 0x333   :  { %677 = dma.done.wait [#allocation5], 16  }
 0x334   :  { %678 = vsyncadd [#allocation5], 4294967280 }
 0x335   :  { %679 = dma.done.wait [#allocation4], 32  }
 0x336   :  { %680 = vsyncadd [#allocation4], 4294967264 }
 0x337   :  { %681 = dma.done.wait [#allocation11], 48  }
 0x338   :  { %682 = vsyncadd [#allocation11], 4294967248 }
 0x339   :  { %510 = sfence }
 0x33a   :  { %511 = vsyncpa [#allocation3], 1 }
 0x33b   :  { %512 = vsyncpa [#allocation7], 1 }
 0x33c   :  { %513 = vsyncpa [#allocation4], 1 }
 0x33d   :  { %514 = vsyncpa [#allocation11], 1 }
 0x33e   :  { %515 = vsyncpa [#allocation5], 1 }

</bundles_post_ra>
